<compile_context>
chip_gen: v6e
topology: v6e:2x2x1
jax: 0.10.0
libtpu: 0.0.40
codegen_flags: <defaults>
</compile_context>

<pallas_src>
import functools

import jax
import jax.numpy as jnp
from jax.experimental import pallas as pl
from jax.experimental.pallas import tpu as pltpu


def _fused_transfer_kernel(acc_ref, gyro_ref,
                           wf_a_ref, bf_a_ref, wh_a_ref, bh_a_ref,
                           wf_g_ref, bf_g_ref, wh_g_ref, bh_g_ref,
                           o_ref):
    """Fused forward (both modalities + both GLU branches) for one batch tile.

    acc_ref/gyro_ref : (TB, Din)  f32    flattened IMU windows
    wf_*_ref         : (Din, E)   bf16   feature-extractor weights (unpadded)
    bf_*_ref         : (1, E)     f32
    wh_*_ref         : (E, 2E)    bf16   GLU head [Wv | Wg] (unpadded)
    bh_*_ref         : (1, 2E)    f32    [bv | bg]
    o_ref            : (TB, 2E)          [acc_out | gyro_out]
    """
    e = wf_a_ref.shape[1]

    def branch(x_ref, wf_ref, bf_ref, wh_ref, bh_ref):
        # f32 -> bf16 operand cast on the VPU (rides under the weight DMA).
        x = x_ref[...].astype(wf_ref.dtype)
        # Stage 1: feature extractor (MXU, bf16 operands, f32 accumulate).
        feat = jnp.dot(x, wf_ref[...], preferred_element_type=jnp.float32)
        feat = jnp.maximum(feat + bf_ref[...], 0.0)            # bias + ReLU in f32
        # Stage 2: GLU head, value and gate in one N=2E MXU pass.
        vg = jnp.dot(feat.astype(wh_ref.dtype), wh_ref[...],
                     preferred_element_type=jnp.float32) + bh_ref[...]
        # Gating epilogue stays in f32 (v5e has no bf16 VPU/EUP).
        return vg[:, :e] * jax.nn.sigmoid(vg[:, e:])

    acc_out = branch(acc_ref, wf_a_ref, bf_a_ref, wh_a_ref, bh_a_ref)
    gyro_out = branch(gyro_ref, wf_g_ref, bf_g_ref, wh_g_ref, bh_g_ref)
    # Concat along lanes: each half is a 128-lane-aligned, unmasked store.
    o_ref[:, :e] = acc_out.astype(o_ref.dtype)
    o_ref[:, e:] = gyro_out.astype(o_ref.dtype)


@functools.partial(jax.jit, static_argnames=("out_dtype",))
def transfer_model_forward(acc, gyro, acc_packed, gyro_packed,
                           out_dtype=jnp.float32):
    """acc, gyro: (B, C, T) float32 in PyTorch NCT layout."""
    B = acc.shape[0]
    din, e = acc_packed["wf"].shape            # (Din, E)
    e2 = acc_packed["wh"].shape[1]             # 2E

    # Only free layout plumbing in XLA: NCT -> (B, C*T) is a contiguous reshape.
    # The modality "concat" and the bf16 cast happen inside the kernel.
    acc_flat = acc.reshape(B, -1)
    gyro_flat = gyro.reshape(B, -1)

    # Batch tile: one big block when the batch is small (pay launch/DMA once and
    # keep the MXU fed with M=B rows); tile only for genuinely large batches.
    if B <= 512:
        tile_b = B
    elif B % 256 == 0:
        tile_b = 256
    elif B % 128 == 0:
        tile_b = 128
    else:
        tile_b = B
    grid = (B // tile_b,)

    # Only shard across v7x's TensorCores when each core gets several tiles;
    # otherwise a parallel split just duplicates the weight DMA per core.
    semantics = ("parallel",) if grid[0] >= 8 else ("arbitrary",)

    x_spec = pl.BlockSpec((tile_b, din), lambda i: (i, 0))

    def const_spec(shape):
        return pl.BlockSpec(shape, lambda i: (0, 0))           # weights stay resident

    return pl.pallas_call(
        _fused_transfer_kernel,
        out_shape=jax.ShapeDtypeStruct((B, e2), out_dtype),
        grid_spec=pltpu.PrefetchScalarGridSpec(
            num_scalar_prefetch=0,
            grid=grid,
            in_specs=[
                x_spec,                         # acc_flat
                x_spec,                         # gyro_flat
                const_spec((din, e)),           # wf_acc
                const_spec((1, e)),             # bf_acc
                const_spec((e, e2)),            # wh_acc = [Wv|Wg]
                const_spec((1, e2)),            # bh_acc = [bv|bg]
                const_spec((din, e)),           # wf_gyro
                const_spec((1, e)),             # bf_gyro
                const_spec((e, e2)),            # wh_gyro
                const_spec((1, e2)),            # bh_gyro
            ],
            out_specs=pl.BlockSpec((tile_b, e2), lambda i: (i, 0)),
        ),
        compiler_params=pltpu.CompilerParams(dimension_semantics=semantics),
    )(acc_flat, gyro_flat,
      acc_packed["wf"], acc_packed["bf"], acc_packed["wh"], acc_packed["bh"],
      gyro_packed["wf"], gyro_packed["bf"], gyro_packed["wh"], gyro_packed["bh"])


def make_params(key, d_in, embed_dim):
    """Deterministic synthetic parameters for one modality branch."""
    ks = jax.random.split(key, 6)
    scale = 0.02
    return dict(
        wf=scale * jax.random.normal(ks[0], (d_in, embed_dim), jnp.float32),
        bf=scale * jax.random.normal(ks[1], (1, embed_dim), jnp.float32),
        wv=scale * jax.random.normal(ks[2], (embed_dim, embed_dim), jnp.float32),
        bv=scale * jax.random.normal(ks[3], (1, embed_dim), jnp.float32),
        wg=scale * jax.random.normal(ks[4], (embed_dim, embed_dim), jnp.float32),
        bg=scale * jax.random.normal(ks[5], (1, embed_dim), jnp.float32),
    )


def pack_params(params, matmul_dtype=jnp.bfloat16):
    """Per-modality packing (done once): matmul operands -> bf16, no zero padding.

    The GLU head is packed as [Wv | Wg] along lanes so value+gate are one N=2E
    MXU pass; biases stay f32 for the f32 epilogue.
    """
    return dict(
        wf=params["wf"].astype(matmul_dtype),
        bf=params["bf"].astype(jnp.float32),
        wh=jnp.concatenate((params["wv"], params["wg"]), axis=1).astype(matmul_dtype),
        bh=jnp.concatenate((params["bv"], params["bg"]), axis=1).astype(jnp.float32),
    )


def _reference_forward(acc, gyro, ap, gp):
    """Pure-JAX reference mirroring the kernel's bf16-operand / f32-accumulate math."""
    def _bf16(w):
        return w.astype(jnp.bfloat16).astype(jnp.float32)

    def branch(x, p):
        x = _bf16(x.reshape(x.shape[0], -1))
        feat = jnp.maximum(x @ _bf16(p["wf"]) + p["bf"], 0.0)
        feat = _bf16(feat)
        v = feat @ _bf16(p["wv"]) + p["bv"]
        g = feat @ _bf16(p["wg"]) + p["bg"]
        return v * jax.nn.sigmoid(g)

    return jnp.concatenate((branch(acc, ap), branch(gyro, gp)), axis=1)


if __name__ == "__main__":
    # Shapes implied by the module: 3-axis IMU windows of 128 samples per modality
    # (MultiModalTransformer((128, 6)) => window 128, 3 acc + 3 gyro channels) and
    # the module's default embed_dim=128.  Batch 32 -> a single batch block.
    B, C, T, E = 32, 3, 128, 128
    key = jax.random.PRNGKey(0)
    k_acc, k_gyro, k_pa, k_pg = jax.random.split(key, 4)

    acc = jax.random.normal(k_acc, (B, C, T), jnp.float32)
    gyro = jax.random.normal(k_gyro, (B, C, T), jnp.float32)

    acc_params = make_params(k_pa, C * T, E)
    gyro_params = make_params(k_pg, C * T, E)
    acc_packed = pack_params(acc_params)
    gyro_packed = pack_params(gyro_params)

    out = transfer_model_forward(acc, gyro, acc_packed, gyro_packed)
    out = jax.block_until_ready(out)

    ref = _reference_forward(acc, gyro, acc_params, gyro_params)
    assert out.shape == (B, 2 * E), out.shape
    max_err = float(jnp.max(jnp.abs(out - ref)))
    assert jnp.allclose(out, ref, atol=5e-4, rtol=3e-3), f"mismatch vs reference: {max_err}"

    print("KERNEL_OK")
</pallas_src>

<mosaic_0001>
module attributes {stable_mosaic.version = 11 : i64} {
  func.func @_fused_transfer_kernel(%arg0: i32, %arg1: memref<32x384xf32, #tpu.memory_space<vmem>>, %arg2: memref<32x384xf32, #tpu.memory_space<vmem>>, %arg3: memref<384x128xbf16, #tpu.memory_space<vmem>>, %arg4: memref<1x128xf32, #tpu.memory_space<vmem>>, %arg5: memref<128x256xbf16, #tpu.memory_space<vmem>>, %arg6: memref<1x256xf32, #tpu.memory_space<vmem>>, %arg7: memref<384x128xbf16, #tpu.memory_space<vmem>>, %arg8: memref<1x128xf32, #tpu.memory_space<vmem>>, %arg9: memref<128x256xbf16, #tpu.memory_space<vmem>>, %arg10: memref<1x256xf32, #tpu.memory_space<vmem>>, %arg11: memref<32x256xf32, #tpu.memory_space<vmem>>) attributes {dimension_semantics = [#tpu.dimension_semantics<arbitrary>], iteration_bounds = array<i64: 1>, scalar_prefetch = 0 : i64, scratch_operands = 0 : i64, tpu.core_type = #tpu.core_type<tc>, window_params = [{transform_indices = @transform_0, window_bounds = array<i64: 32, 384>}, {transform_indices = @transform_1, window_bounds = array<i64: 32, 384>}, {pipeline_mode = #tpu.pipeline_mode<synchronous>, transform_indices = @transform_2, window_bounds = array<i64: 384, 128>}, {pipeline_mode = #tpu.pipeline_mode<synchronous>, transform_indices = @transform_3, window_bounds = array<i64: 1, 128>}, {pipeline_mode = #tpu.pipeline_mode<synchronous>, transform_indices = @transform_4, window_bounds = array<i64: 128, 256>}, {pipeline_mode = #tpu.pipeline_mode<synchronous>, transform_indices = @transform_5, window_bounds = array<i64: 1, 256>}, {pipeline_mode = #tpu.pipeline_mode<synchronous>, transform_indices = @transform_6, window_bounds = array<i64: 384, 128>}, {pipeline_mode = #tpu.pipeline_mode<synchronous>, transform_indices = @transform_7, window_bounds = array<i64: 1, 128>}, {pipeline_mode = #tpu.pipeline_mode<synchronous>, transform_indices = @transform_8, window_bounds = array<i64: 128, 256>}, {pipeline_mode = #tpu.pipeline_mode<synchronous>, transform_indices = @transform_9, window_bounds = array<i64: 1, 256>}, {transform_indices = @transform_10, window_bounds = array<i64: 32, 256>}]} {
    %c0 = arith.constant 0 : index
    %c0_0 = arith.constant 0 : index
    %0 = vector.load %arg1[%c0, %c0_0] : memref<32x384xf32, #tpu.memory_space<vmem>>, vector<32x384xf32>
    %1 = arith.truncf %0 : vector<32x384xf32> to vector<32x384xbf16>
    %c0_1 = arith.constant 0 : index
    %c0_2 = arith.constant 0 : index
    %2 = vector.load %arg3[%c0_1, %c0_2] : memref<384x128xbf16, #tpu.memory_space<vmem>>, vector<384x128xbf16>
    %cst = arith.constant dense<0.000000e+00> : vector<32x128xf32>
    %3 = tpu.matmul %1, %2, %cst {dimension_numbers = #tpu.dot_dimension_numbers<[1], [0], [0], [1], [0, 0, 1, 1], [], []>} : vector<32x384xbf16>, vector<384x128xbf16>, vector<32x128xf32> -> vector<32x128xf32>
    %c0_3 = arith.constant 0 : index
    %c0_4 = arith.constant 0 : index
    %4 = vector.load %arg4[%c0_3, %c0_4] : memref<1x128xf32, #tpu.memory_space<vmem>>, vector<1x128xf32>
    %5 = vector.broadcast %4 : vector<1x128xf32> to vector<32x128xf32>
    %6 = arith.addf %3, %5 : vector<32x128xf32>
    %cst_5 = arith.constant 0.000000e+00 : f32
    %7 = vector.broadcast %cst_5 : f32 to vector<32x128xf32>
    %8 = arith.maximumf %6, %7 : vector<32x128xf32>
    %9 = arith.truncf %8 : vector<32x128xf32> to vector<32x128xbf16>
    %c0_6 = arith.constant 0 : index
    %c0_7 = arith.constant 0 : index
    %10 = vector.load %arg5[%c0_6, %c0_7] : memref<128x256xbf16, #tpu.memory_space<vmem>>, vector<128x256xbf16>
    %cst_8 = arith.constant dense<0.000000e+00> : vector<32x256xf32>
    %11 = tpu.matmul %9, %10, %cst_8 {dimension_numbers = #tpu.dot_dimension_numbers<[1], [0], [0], [1], [0, 0, 1, 1], [], []>} : vector<32x128xbf16>, vector<128x256xbf16>, vector<32x256xf32> -> vector<32x256xf32>
    %c0_9 = arith.constant 0 : index
    %c0_10 = arith.constant 0 : index
    %12 = vector.load %arg6[%c0_9, %c0_10] : memref<1x256xf32, #tpu.memory_space<vmem>>, vector<1x256xf32>
    %13 = vector.broadcast %12 : vector<1x256xf32> to vector<32x256xf32>
    %14 = arith.addf %11, %13 : vector<32x256xf32>
    %15 = vector.extract_strided_slice %14 {offsets = [0, 0], sizes = [32, 128], strides = [1, 1]} : vector<32x256xf32> to vector<32x128xf32>
    %16 = vector.extract_strided_slice %14 {offsets = [0, 128], sizes = [32, 128], strides = [1, 1]} : vector<32x256xf32> to vector<32x128xf32>
    %17 = arith.negf %16 : vector<32x128xf32>
    %18 = math.exp %17 : vector<32x128xf32>
    %cst_11 = arith.constant 1.000000e+00 : f32
    %19 = vector.broadcast %cst_11 : f32 to vector<32x128xf32>
    %20 = arith.addf %19, %18 : vector<32x128xf32>
    %21 = arith.divf %19, %20 : vector<32x128xf32>
    %22 = arith.mulf %15, %21 : vector<32x128xf32>
    %c0_12 = arith.constant 0 : index
    %c0_13 = arith.constant 0 : index
    %23 = vector.load %arg2[%c0_12, %c0_13] : memref<32x384xf32, #tpu.memory_space<vmem>>, vector<32x384xf32>
    %24 = arith.truncf %23 : vector<32x384xf32> to vector<32x384xbf16>
    %c0_14 = arith.constant 0 : index
    %c0_15 = arith.constant 0 : index
    %25 = vector.load %arg7[%c0_14, %c0_15] : memref<384x128xbf16, #tpu.memory_space<vmem>>, vector<384x128xbf16>
    %cst_16 = arith.constant dense<0.000000e+00> : vector<32x128xf32>
    %26 = tpu.matmul %24, %25, %cst_16 {dimension_numbers = #tpu.dot_dimension_numbers<[1], [0], [0], [1], [0, 0, 1, 1], [], []>} : vector<32x384xbf16>, vector<384x128xbf16>, vector<32x128xf32> -> vector<32x128xf32>
    %c0_17 = arith.constant 0 : index
    %c0_18 = arith.constant 0 : index
    %27 = vector.load %arg8[%c0_17, %c0_18] : memref<1x128xf32, #tpu.memory_space<vmem>>, vector<1x128xf32>
    %28 = vector.broadcast %27 : vector<1x128xf32> to vector<32x128xf32>
    %29 = arith.addf %26, %28 : vector<32x128xf32>
    %cst_19 = arith.constant 0.000000e+00 : f32
    %30 = vector.broadcast %cst_19 : f32 to vector<32x128xf32>
    %31 = arith.maximumf %29, %30 : vector<32x128xf32>
    %32 = arith.truncf %31 : vector<32x128xf32> to vector<32x128xbf16>
    %c0_20 = arith.constant 0 : index
    %c0_21 = arith.constant 0 : index
    %33 = vector.load %arg9[%c0_20, %c0_21] : memref<128x256xbf16, #tpu.memory_space<vmem>>, vector<128x256xbf16>
    %cst_22 = arith.constant dense<0.000000e+00> : vector<32x256xf32>
    %34 = tpu.matmul %32, %33, %cst_22 {dimension_numbers = #tpu.dot_dimension_numbers<[1], [0], [0], [1], [0, 0, 1, 1], [], []>} : vector<32x128xbf16>, vector<128x256xbf16>, vector<32x256xf32> -> vector<32x256xf32>
    %c0_23 = arith.constant 0 : index
    %c0_24 = arith.constant 0 : index
    %35 = vector.load %arg10[%c0_23, %c0_24] : memref<1x256xf32, #tpu.memory_space<vmem>>, vector<1x256xf32>
    %36 = vector.broadcast %35 : vector<1x256xf32> to vector<32x256xf32>
    %37 = arith.addf %34, %36 : vector<32x256xf32>
    %38 = vector.extract_strided_slice %37 {offsets = [0, 0], sizes = [32, 128], strides = [1, 1]} : vector<32x256xf32> to vector<32x128xf32>
    %39 = vector.extract_strided_slice %37 {offsets = [0, 128], sizes = [32, 128], strides = [1, 1]} : vector<32x256xf32> to vector<32x128xf32>
    %40 = arith.negf %39 : vector<32x128xf32>
    %41 = math.exp %40 : vector<32x128xf32>
    %cst_25 = arith.constant 1.000000e+00 : f32
    %42 = vector.broadcast %cst_25 : f32 to vector<32x128xf32>
    %43 = arith.addf %42, %41 : vector<32x128xf32>
    %44 = arith.divf %42, %43 : vector<32x128xf32>
    %45 = arith.mulf %38, %44 : vector<32x128xf32>
    %c0_26 = arith.constant 0 : index
    %c0_27 = arith.constant 0 : index
    %46 = vector.load %arg11[%c0_26, %c0_27] : memref<32x256xf32, #tpu.memory_space<vmem>>, vector<32x128xf32>
    tpu.vector_store %arg11[%c0_26, %c0_27], %22 {strides = array<i32>} : memref<32x256xf32, #tpu.memory_space<vmem>>, vector<32x128xf32>,
    %c0_28 = arith.constant 0 : index
    %c128 = arith.constant 128 : index
    %47 = vector.load %arg11[%c0_28, %c128] : memref<32x256xf32, #tpu.memory_space<vmem>>, vector<32x128xf32>
    tpu.vector_store %arg11[%c0_28, %c128], %45 {strides = array<i32>} : memref<32x256xf32, #tpu.memory_space<vmem>>, vector<32x128xf32>,
    return
  }
  func.func @transform_0(%arg0: i32) -> (i32, i32) {
    %c0_i32 = arith.constant 0 : i32
    %c0_i32_0 = arith.constant 0 : i32
    return %arg0, %c0_i32 : i32, i32
  }
  func.func @transform_1(%arg0: i32) -> (i32, i32) {
    %c0_i32 = arith.constant 0 : i32
    %c0_i32_0 = arith.constant 0 : i32
    return %arg0, %c0_i32 : i32, i32
  }
  func.func @transform_2(%arg0: i32) -> (i32, i32) {
    %c0_i32 = arith.constant 0 : i32
    %c0_i32_0 = arith.constant 0 : i32
    %c0_i32_1 = arith.constant 0 : i32
    return %c0_i32, %c0_i32_0 : i32, i32
  }
  func.func @transform_3(%arg0: i32) -> (i32, i32) {
    %c0_i32 = arith.constant 0 : i32
    %c0_i32_0 = arith.constant 0 : i32
    %c0_i32_1 = arith.constant 0 : i32
    return %c0_i32, %c0_i32_0 : i32, i32
  }
  func.func @transform_4(%arg0: i32) -> (i32, i32) {
    %c0_i32 = arith.constant 0 : i32
    %c0_i32_0 = arith.constant 0 : i32
    %c0_i32_1 = arith.constant 0 : i32
    return %c0_i32, %c0_i32_0 : i32, i32
  }
  func.func @transform_5(%arg0: i32) -> (i32, i32) {
    %c0_i32 = arith.constant 0 : i32
    %c0_i32_0 = arith.constant 0 : i32
    %c0_i32_1 = arith.constant 0 : i32
    return %c0_i32, %c0_i32_0 : i32, i32
  }
  func.func @transform_6(%arg0: i32) -> (i32, i32) {
    %c0_i32 = arith.constant 0 : i32
    %c0_i32_0 = arith.constant 0 : i32
    %c0_i32_1 = arith.constant 0 : i32
    return %c0_i32, %c0_i32_0 : i32, i32
  }
  func.func @transform_7(%arg0: i32) -> (i32, i32) {
    %c0_i32 = arith.constant 0 : i32
    %c0_i32_0 = arith.constant 0 : i32
    %c0_i32_1 = arith.constant 0 : i32
    return %c0_i32, %c0_i32_0 : i32, i32
  }
  func.func @transform_8(%arg0: i32) -> (i32, i32) {
    %c0_i32 = arith.constant 0 : i32
    %c0_i32_0 = arith.constant 0 : i32
    %c0_i32_1 = arith.constant 0 : i32
    return %c0_i32, %c0_i32_0 : i32, i32
  }
  func.func @transform_9(%arg0: i32) -> (i32, i32) {
    %c0_i32 = arith.constant 0 : i32
    %c0_i32_0 = arith.constant 0 : i32
    %c0_i32_1 = arith.constant 0 : i32
    return %c0_i32, %c0_i32_0 : i32, i32
  }
  func.func @transform_10(%arg0: i32) -> (i32, i32) {
    %c0_i32 = arith.constant 0 : i32
    %c0_i32_0 = arith.constant 0 : i32
    return %arg0, %c0_i32 : i32, i32
  }
}

</mosaic_0001>

<bundles_post_ra>
// kernel: transfer_model_forward.1
= control target key start
LH: loop header
LB: loop body
LE: loop exit
PB: predicated region body
PF: predicated region fallthrough
CT: control target
= control target key end

     0   :  { %15 = vsyncpa [#allocation3], 0  ;;  %s1839_s0 = inlined_call_operand.vmem [shape: f32[32,384], index: 0, kind: input, shape index: {}]   ;;  %s1840_s1 = inlined_call_operand.vmem [shape: f32[32,384], index: 1, kind: input, shape index: {}]   ;;  %s1841_s2 = inlined_call_operand.vmem [shape: bf16[384,128], index: 2, kind: input, shape index: {}]   ;;  %s1842_s3 = inlined_call_operand.vmem [shape: f32[1,128], index: 3, kind: input, shape index: {}]   ;;  %s1843_s4 = inlined_call_operand.hbm [shape: bf16[128,256], index: 4, kind: input, shape index: {}]   ;;  %s1844_s5 = inlined_call_operand.vmem [shape: f32[1,256], index: 5, kind: input, shape index: {}]   ;;  %s1845_s6 = inlined_call_operand.vmem [shape: bf16[384,128], index: 6, kind: input, shape index: {}]   ;;  %s1846_s7 = inlined_call_operand.vmem [shape: f32[1,128], index: 7, kind: input, shape index: {}]   ;;  %s1847_s8 = inlined_call_operand.hbm [shape: bf16[128,256], index: 8, kind: input, shape index: {}]   ;;  %s1848_s9 = inlined_call_operand.vmem [shape: f32[1,256], index: 9, kind: input, shape index: {}]   ;;  %s1849_s10 = inlined_call_operand.hbm [shape: f32[32,256], index: 10, kind: output, shape index: {}]  }
   0x1   :  { %16 = vsyncpa [#allocation6], 0 }
   0x2   :  { %17 = vsyncpa [#allocation4], 0  ;;  %s1519_s13 = smov [#allocation2]  }
   0x3   :  { %s31_s14 = sshll.u32 %s1519_s13, 4  ;;  %s32_s14 = int_to_ptr.vmem [resolvable:$true] %s31_s14 }
   0x4   :  { %s1461_s15 = scalar_lea.vmem %s32_s14, 2048  ;;  %p1466_p1 = scmp.lt.s32.totalorder %s32_s14, %s32_s14 }
   0x5   :  { %p1462_p0 = scmp.ne.s32.totalorder %s32_s14, %s1461_s15  ;;  %p1467_p2 = scmp.lt.s32.totalorder %s1461_s15, %s1461_s15 }
   0x7   :  { %p1468_p3 = por %p1467_p2, %p1466_p1 }
   0x9   :  { %p1469_p4 = pnand %p1468_p3, %p1462_p0 }
   0xb   :  { %1472 = shalt.err (!%p1469_p4)
}
   0xc   :  { %s1520_s16 = smov 128   ;;  %s1521_s17 = smov 8  }
   0xd   :  { %37 = dma.hbm_to_vmem [thread:$0]  %s1843_s4, 2048, %s32_s14, [#allocation3], %s1520_s16, %s1520_s16, %s1521_s17  }
   0xe   :  { %s1522_s20 = smov [#allocation5]  }
   0xf   :  { %s49_s21 = sshll.u32 %s1522_s20, 4  ;;  %s50_s21 = int_to_ptr.vmem [resolvable:$true] %s49_s21 }
  0x10   :  { %s1481_s22 = scalar_lea.vmem %s50_s21, 2048  ;;  %p1486_p6 = scmp.lt.s32.totalorder %s50_s21, %s50_s21 }
  0x11   :  { %p1482_p5 = scmp.ne.s32.totalorder %s50_s21, %s1481_s22  ;;  %p1487_p7 = scmp.lt.s32.totalorder %s1481_s22, %s1481_s22 }
  0x13   :  { %p1488_p8 = por %p1487_p7, %p1486_p6 }
  0x15   :  { %p1489_p9 = pnand %p1488_p8, %p1482_p5 }
  0x17   :  { %1492 = shalt.err (!%p1489_p9)
}
  0x18   :  { %55 = dma.hbm_to_vmem [thread:$0]  %s1847_s8, 2048, %s50_s21, [#allocation6], %s1520_s16, %s1520_s16, %s1521_s17  }
  0x19   :  { %1513 = dma.done.wait [#allocation3], 2048  }
  0x1a   :  { %1514 = vsyncadd [#allocation3], 4294965248 }
  0x1b   :  { %1515 = dma.done.wait [#allocation6], 2048  }
  0x1c   :  { %1516 = vsyncadd [#allocation6], 4294965248  ;;  %v1325_v0 = vld [vmem:[%s1841_s2 + $0x78] sm:$0xff]   ;;  %v1328_v3 = vld [vmem:[%s1841_s2 + $0x70] sm:$0xff]  }
  0x1d   :  { %v1326_v1 = vld [vmem:[%s1841_s2 + $0xb8] sm:$0xff]   ;;  %1201 = vmatprep.subr.bf16.mxu0 %v1325_v0  ;;  %v1329_v4 = vld [vmem:[%s1841_s2 + $0xb0] sm:$0xff]   ;;  %v1331_v6 = vld [vmem:[%s1841_s2 + $0x68] sm:$0xff]  }
  0x1e   :  { %v1327_v2 = vld [vmem:[%s1841_s2 + $0x38] sm:$0xff]   ;;  %1277 = vmatprep.subr.bf16.mxu1 %v1326_v1  ;;  %v1330_v5 = vld [vmem:[%s1841_s2 + $0x30] sm:$0xff]   ;;  %v1332_v7 = vld [vmem:[%s1841_s2 + $0xa8] sm:$0xff]  }
  0x1f   :  { %1202 = vmatpush3.bf16.msra.mxu0 %v1327_v2  ;;  %1278 = vmatpush3.bf16.msra.mxu1 %v1326_v1  ;;  %v1333_v8 = vld [vmem:[%s1841_s2 + $0x28] sm:$0xff]   ;;  %v1334_v9 = vld [vmem:[%s1841_s2 + $0x60] sm:$0xff]   ;;  %v1337_v12 = vld [vmem:[%s1841_s2 + $0x58] sm:$0xff]  }
  0x20   :  { %1203 = vmatprep.subr.bf16.mxu0 %v1328_v3  ;;  %1279 = vmatprep.subr.bf16.mxu1 %v1329_v4  ;;  %v1335_v10 = vld [vmem:[%s1841_s2 + $0xa0] sm:$0xff]   ;;  %v1338_v13 = vld [vmem:[%s1841_s2 + $0x98] sm:$0xff]   ;;  %v1340_v15 = vld [vmem:[%s1841_s2 + $0x50] sm:$0xff]   ;;  %v1523_v3 = vmov 0  }
  0x21   :  { %v1336_v11 = vld [vmem:[%s1841_s2 + $0x20] sm:$0xff]   ;;  %v1339_v14 = vld [vmem:[%s1841_s2 + $0x18] sm:$0xff]   ;;  %v1341_v16 = vld [vmem:[%s1841_s2 + $0x90] sm:$0xff]  }
  0x22   :  { %v1342_v17 = vld [vmem:[%s1841_s2 + $0x10] sm:$0xff]   ;;  %v1343_v18 = vld [vmem:[%s1841_s2 + $0x48] sm:$0xff]   ;;  %v69_v22 = vld [vmem:[%s1839_s0 + $0x20] sm:$0xff] }
  0x23   :  { %1204 = vmatpush3.bf16.msra.mxu0 %v1330_v5  ;;  %1280 = vmatpush3.bf16.msra.mxu1 %v1329_v4  ;;  %v1344_v19 = vld [vmem:[%s1841_s2 + $0x88] sm:$0xff]   ;;  %v67_v23 = vld [vmem:[%s1839_s0 + $0x10] sm:$0xff]  ;;  %v1346_v24 = vld [vmem:[%s1841_s2 + $0x40] sm:$0xff]  }
  0x24   :  { %1205 = vmatprep.subr.bf16.mxu0 %v1331_v6  ;;  %1281 = vmatprep.subr.bf16.mxu1 %v1332_v7  ;;  %v1345_v20 = vld [vmem:[%s1841_s2 + $0x8] sm:$0xff]   ;;  %v1347_v25 = vld [vmem:[%s1841_s2 + $0x80] sm:$0xff]   ;;  %v68_v31 = vld [vmem:[%s1839_s0 + $0x18] sm:$0xff] }
  0x25   :  { %v66_v21 = vld [vmem:[%s1839_s0 + $0x8] sm:$0xff]  ;;  %v1348_v28 = vld [vmem:[%s1841_s2] sm:$0xff]   ;;  %v76_v33 = vld [vmem:[%s1839_s0 + $0x58] sm:$0xff] }
  0x26   :  { %v78_v26 = vpack.c.bf16 %v69_v22, %v66_v21  ;;  %v70_v27 = vld [vmem:[%s1839_s0 + $0x28] sm:$0xff]  ;;  %v65_v30 = vld [vmem:[%s1839_s0] sm:$0xff]  ;;  %v72_v34 = vld [vmem:[%s1839_s0 + $0x38] sm:$0xff] }
  0x27   :  { %1206 = vmatpush3.bf16.msra.mxu0 %v1333_v8  ;;  %1282 = vmatpush3.bf16.msra.mxu1 %v1332_v7  ;;  %v79_v29 = vpack.c.bf16 %v70_v27, %v67_v23  ;;  %v73_v32 = vld [vmem:[%s1839_s0 + $0x40] sm:$0xff]  ;;  %v75_v35 = vld [vmem:[%s1839_s0 + $0x50] sm:$0xff]  ;;  %v77_v37 = vpack.c.bf16 %v68_v31, %v65_v30  ;;  %v74_v43 = vld [vmem:[%s1839_s0 + $0x48] sm:$0xff] }
  0x28   :  { %1207 = vmatprep.subr.bf16.mxu0 %v1334_v9  ;;  %1283 = vmatprep.subr.bf16.mxu1 %v1335_v10  ;;  %v1351_v36 = vld [vmem:[#allocation2 + $0x74] ss:$8 sps:$4 sm:$0xff]   ;;  %v82_v38 = vpack.c.bf16 %v76_v33, %v73_v32  ;;  %v81_v39 = vpack.c.bf16 %v75_v35, %v72_v34  ;;  %v1349_v40 = vld [vmem:[#allocation2 + $0x70] ss:$8 sps:$4 sm:$0xff]   ;;  %v1354_v41 = vld [vmem:[#allocation2 + $0x64] ss:$8 sps:$4 sm:$0xff]  }
  0x29   :  { %314 = vmatprep.mubr.bf16.mxu0 %v78_v26  ;;  %1293 = vmatprep.mubr.bf16.mxu1 %v79_v29  ;;  %v71_v42 = vld [vmem:[%s1839_s0 + $0x30] sm:$0xff]  ;;  %v1352_v44 = vld [vmem:[#allocation2 + $0x60] ss:$8 sps:$4 sm:$0xff]   ;;  %v1360_v48 = vld [vmem:[#allocation2 + $0x44] ss:$8 sps:$4 sm:$0xff]  }
  0x2a   :  { %v1357_v45 = vld [vmem:[#allocation2 + $0x54] ss:$8 sps:$4 sm:$0xff]   ;;  %v1355_v46 = vld [vmem:[#allocation2 + $0x50] ss:$8 sps:$4 sm:$0xff]   ;;  %v80_v47 = vpack.c.bf16 %v74_v43, %v71_v42  ;;  %v1358_v49 = vld [vmem:[#allocation2 + $0x40] ss:$8 sps:$4 sm:$0xff]  }
  0x2b   :  { %1208 = vmatpush3.bf16.msra.mxu0 %v1336_v11  ;;  %1284 = vmatpush3.bf16.msra.mxu1 %v1335_v10  ;;  %v1363_v50 = vld [vmem:[#allocation2 + $0x34] ss:$8 sps:$4 sm:$0xff]   ;;  %v1361_v51 = vld [vmem:[#allocation2 + $0x30] ss:$8 sps:$4 sm:$0xff]   ;;  %v1368_v54 = vld [vmem:[#allocation2 + $0x24] ss:$8 sps:$4 sm:$0xff]  }
  0x2c   :  { %1209 = vmatprep.subr.bf16.mxu0 %v1337_v12  ;;  %1285 = vmatprep.subr.bf16.mxu1 %v1338_v13  ;;  %v1364_v52 = vld [vmem:[%s1845_s6 + $0x78] sm:$0xff]   ;;  %v1366_v55 = vld [vmem:[#allocation2 + $0x20] ss:$8 sps:$4 sm:$0xff]   ;;  %v1369_v56 = vld [vmem:[%s1845_s6 + $0x70] sm:$0xff]  }
  0x2d   :  { %v1365_v53 = vld [vmem:[%s1845_s6 + $0x38] sm:$0xff]   ;;  %v1370_v57 = vld [vmem:[%s1845_s6 + $0x30] sm:$0xff]   ;;  %v1374_v60 = vld [vmem:[%s1845_s6 + $0x68] sm:$0xff]  }
  0x2e   :  { %v1373_v58 = vld [vmem:[#allocation2 + $0x14] ss:$8 sps:$4 sm:$0xff]   ;;  %v1371_v59 = vld [vmem:[#allocation2 + $0x10] ss:$8 sps:$4 sm:$0xff]   ;;  %v1375_v61 = vld [vmem:[%s1845_s6 + $0x28] sm:$0xff]  }
  0x2f   :  { %1210 = vmatpush3.bf16.msra.mxu0 %v1339_v14  ;;  %1286 = vmatpush3.bf16.msra.mxu1 %v1338_v13  ;;  %v1378_v62 = vld [vmem:[#allocation2 + $0x4] ss:$8 sps:$4 sm:$0xff]   ;;  %v1376_v63 = vld [vmem:[#allocation2] ss:$8 sps:$4 sm:$0xff]   ;;  %v1723_v2 = vld [vmem:[%s1845_s6 + $0xb8] sm:$0xff]  }
  0x30   :  { %1211 = vmatprep.subr.bf16.mxu0 %v1340_v15  ;;  %1287 = vmatprep.subr.bf16.mxu1 %v1341_v16  ;;  %v1379_v0 = vld [vmem:[%s1845_s6 + $0x60] sm:$0xff]   ;;  %v1382_v4 = vld [vmem:[%s1845_s6 + $0x58] sm:$0xff]   ;;  %v1385_v6 = vld [vmem:[%s1845_s6 + $0x50] sm:$0xff]  }
  0x31   :  { %v1380_v1 = vld [vmem:[%s1845_s6 + $0x20] sm:$0xff]   ;;  %v1383_v5 = vld [vmem:[%s1845_s6 + $0x18] sm:$0xff]   ;;  %v1386_v7 = vld [vmem:[%s1845_s6 + $0x10] sm:$0xff]  }
  0x32   :  { %v1388_v8 = vld [vmem:[%s1845_s6 + $0x48] sm:$0xff]   ;;  %v1391_v10 = vld [vmem:[%s1845_s6 + $0x40] sm:$0xff]   ;;  %v581_v21 = vld [vmem:[%s1840_s1 + $0x30] sm:$0xff] }
  0x33   :  { %1212 = vmatpush3.bf16.msra.mxu0 %v1342_v17  ;;  %1288 = vmatpush3.bf16.msra.mxu1 %v1341_v16  ;;  %v1389_v9 = vld [vmem:[%s1845_s6 + $0x8] sm:$0xff]   ;;  %v1392_v11 = vld [vmem:[%s1845_s6] sm:$0xff]   ;;  %v578_v16 = vld [vmem:[%s1840_s1 + $0x18] sm:$0xff] }
  0x34   :  { %1213 = vmatprep.subr.bf16.mxu0 %v1343_v18  ;;  %1289 = vmatprep.subr.bf16.mxu1 %v1344_v19  ;;  %v576_v12 = vld [vmem:[%s1840_s1 + $0x8] sm:$0xff]  ;;  %v579_v13 = vld [vmem:[%s1840_s1 + $0x20] sm:$0xff]  ;;  %v582_v18 = vld [vmem:[%s1840_s1 + $0x38] sm:$0xff] }
  0x35   :  { %v588_v14 = vpack.c.bf16 %v579_v13, %v576_v12  ;;  %v575_v15 = vld [vmem:[%s1840_s1] sm:$0xff]  ;;  %v584_v22 = vld [vmem:[%s1840_s1 + $0x48] sm:$0xff]  ;;  %v1411_v13 = vld [vmem:[#allocation5 + $0x34] ss:$8 sps:$4 sm:$0xff]  }
  0x36   :  { %v587_v17 = vpack.c.bf16 %v578_v16, %v575_v15  ;;  %v590_v23 = vpack.c.bf16 %v584_v22, %v581_v21  ;;  %v1111_v27 = vld [vmem:[%s1842_s3] ss:$0 sm:$0xff]  ;;  %v1414_v15 = vld [vmem:[#allocation5 + $0x24] ss:$8 sps:$4 sm:$0xff]   ;;  %v404_v21 = vlaneseq }
  0x37   :  { %1214 = vmatpush3.bf16.msra.mxu0 %v1345_v20  ;;  %1290 = vmatpush3.bf16.msra.mxu1 %v1344_v19  ;;  %v585_v19 = vld [vmem:[%s1840_s1 + $0x50] sm:$0xff]  ;;  %v1406_v12 = vld [vmem:[#allocation5 + $0x40] ss:$8 sps:$4 sm:$0xff]  }
  0x38   :  { %1215 = vmatprep.subr.bf16.mxu0 %v1346_v24  ;;  %1291 = vmatprep.subr.bf16.mxu1 %v1347_v25  ;;  %v591_v20 = vpack.c.bf16 %v585_v19, %v582_v18  ;;  %v1412_v16 = vld [vmem:[#allocation5 + $0x20] ss:$8 sps:$4 sm:$0xff]   ;;  %v1415_v18 = vld [vmem:[#allocation5 + $0x10] ss:$8 sps:$4 sm:$0xff]   ;;  %v1420_v19 = vld [vmem:[#allocation5 + $0x4] ss:$8 sps:$4 sm:$0xff]  }
  0x39   :  { %v1814_v22 = vshrl.u32 %v404_v21, 7 }
  0x3b   :  { %1216 = vmatpush3.bf16.msra.mxu0 %v1348_v28  ;;  %1292 = vmatpush3.bf16.msra.mxu1 %v1347_v25 }
  0x3c   :  { %494 = vmatprep.subr.bf16.mxu0 %v1351_v36  ;;  %1239 = vmatprep.subr.bf16.mxu1 %v1364_v52 }
  0x3e   :  { %315 = vmatmul.mubr.bf16.vlgmr.msra.gmra.mxu0 %v77_v37  ;;  %1294 = vmatmul.mubr.bf16.vlgmr.msra.gmra.mxu1 %v82_v38 }
  0x3f   :  { %322 = vmatprep.mubr.bf16.mxu0 %v81_v39  ;;  %495 = vmatpush1.bf16.msra.mxu0 %v1349_v40 }
  0x40   :  { %496 = vmatprep.subr.bf16.mxu0 %v1354_v41  ;;  %1240 = vmatpush3.bf16.msra.mxu1 %v1365_v53  ;;  %v1387_v53 = vld [vmem:[%s1845_s6 + $0xa8] sm:$0xff]  }
  0x41   :  { %1241 = vmatprep.subr.bf16.mxu1 %v1369_v56  ;;  %824 = vmatprep.mubr.bf16.mxu1 %v588_v14  ;;  %v1409_v14 = vld [vmem:[#allocation5 + $0x30] ss:$8 sps:$4 sm:$0xff]  }
  0x43   :  { %497 = vmatpush1.bf16.msra.mxu0 %v1352_v44 }
  0x44   :  { %498 = vmatprep.subr.bf16.mxu0 %v1357_v45  ;;  %1242 = vmatpush3.bf16.msra.mxu1 %v1370_v57 }
  0x45   :  { %1243 = vmatprep.subr.bf16.mxu1 %v1374_v60  ;;  %v1390_v60 = vld [vmem:[%s1845_s6 + $0xa0] sm:$0xff]  }
  0x46   :  { %323 = vmatmul.mubr.bf16.gmra.mxu0 %v80_v47 }
  0x47   :  { %499 = vmatpush1.bf16.msra.mxu0 %v1355_v46  ;;  %526 = vmatprep.mubr.bf16.mxu0 %v1523_v3 }
  0x48   :  { %500 = vmatprep.subr.bf16.mxu0 %v1360_v48  ;;  %1244 = vmatpush3.bf16.msra.mxu1 %v1375_v61  ;;  %v1393_v61 = vld [vmem:[%s1845_s6 + $0x98] sm:$0xff]  }
  0x49   :  { %1245 = vmatprep.subr.bf16.mxu1 %v1379_v0  ;;  %v1396_v0 = vld [vmem:[%s1845_s6 + $0x80] sm:$0xff]  }
  0x4b   :  { %501 = vmatpush1.bf16.msra.mxu0 %v1358_v49  ;;  %v1384_v49 = vld [vmem:[%s1845_s6 + $0xb0] sm:$0xff]  }
  0x4c   :  { %502 = vmatprep.subr.bf16.mxu0 %v1363_v50  ;;  %1246 = vmatpush3.bf16.msra.mxu1 %v1380_v1  ;;  %v583_v1 = vld [vmem:[%s1840_s1 + $0x40] sm:$0xff] }
  0x4d   :  { %1247 = vmatprep.subr.bf16.mxu1 %v1382_v4 }
  0x4f   :  { %503 = vmatpush1.bf16.msra.mxu0 %v1361_v51 }
  0x50   :  { %504 = vmatprep.subr.bf16.mxu0 %v1368_v54  ;;  %1248 = vmatpush3.bf16.msra.mxu1 %v1383_v5  ;;  %v577_v54 = vld [vmem:[%s1840_s1 + $0x10] sm:$0xff] }
  0x51   :  { %1249 = vmatprep.subr.bf16.mxu1 %v1385_v6  ;;  %v1399_v5 = vld [vmem:[#allocation5 + $0x74] ss:$8 sps:$4 sm:$0xff]   ;;  %v1397_v6 = vld [vmem:[#allocation5 + $0x70] ss:$8 sps:$4 sm:$0xff]  }
  0x53   :  { %505 = vmatpush1.bf16.msra.mxu0 %v1366_v55  ;;  %v580_v55 = vld [vmem:[%s1840_s1 + $0x28] sm:$0xff] }
  0x54   :  { %506 = vmatprep.subr.bf16.mxu0 %v1373_v58  ;;  %1250 = vmatpush3.bf16.msra.mxu1 %v1386_v7  ;;  %v589_v58 = vpack.c.bf16 %v580_v55, %v577_v54  ;;  %v1402_v7 = vld [vmem:[#allocation5 + $0x64] ss:$8 sps:$4 sm:$0xff]  }
  0x55   :  { %1251 = vmatprep.subr.bf16.mxu1 %v1388_v8  ;;  %v1400_v8 = vld [vmem:[#allocation5 + $0x60] ss:$8 sps:$4 sm:$0xff]  }
  0x57   :  { %507 = vmatpush1.bf16.msra.mxu0 %v1371_v59 }
  0x58   :  { %508 = vmatprep.subr.bf16.mxu0 %v1378_v62  ;;  %1252 = vmatpush3.bf16.msra.mxu1 %v1389_v9  ;;  %v1394_v62 = vld [vmem:[%s1845_s6 + $0x90] sm:$0xff]  }
  0x59   :  { %1253 = vmatprep.subr.bf16.mxu1 %v1391_v10  ;;  %v1405_v9 = vld [vmem:[#allocation5 + $0x54] ss:$8 sps:$4 sm:$0xff]   ;;  %v1403_v10 = vld [vmem:[#allocation5 + $0x50] ss:$8 sps:$4 sm:$0xff]  }
  0x5b   :  { %509 = vmatpush1.bf16.msra.mxu0 %v1376_v63  ;;  %v1395_v63 = vld [vmem:[%s1845_s6 + $0x88] sm:$0xff]  }
  0x5c   :  { %1297 = vmatprep.subr.bf16.mxu0 %v1723_v2  ;;  %1254 = vmatpush3.bf16.msra.mxu1 %v1392_v11  ;;  %v1408_v11 = vld [vmem:[#allocation5 + $0x44] ss:$8 sps:$4 sm:$0xff]  }
  0x5d   :  { %1004 = vmatprep.subr.bf16.mxu1 %v1399_v5 }
  0x5f   :  { %825 = vmatmul.mubr.bf16.vlgmr.msra.gmra.mxu1 %v587_v17  ;;  %v1417_v17 = vld [vmem:[#allocation5 + $0x14] ss:$8 sps:$4 sm:$0xff]  }
  0x60   :  { %832 = vmatprep.mubr.bf16.mxu1 %v591_v20  ;;  %1005 = vmatpush1.bf16.msra.mxu1 %v1397_v6  ;;  %v1418_v20 = vld [vmem:[#allocation5] ss:$8 sps:$4 sm:$0xff]  }
  0x61   :  { %1006 = vmatprep.subr.bf16.mxu1 %v1402_v7 }
  0x64   :  { %1007 = vmatpush1.bf16.msra.mxu1 %v1400_v8 }
  0x65   :  { %1008 = vmatprep.subr.bf16.mxu1 %v1405_v9 }
  0x67   :  { %833 = vmatmul.mubr.bf16.gmra.mxu1 %v590_v23  ;;  %v410_v23 = vsub.s32 1, %v1814_v22 }
  0x68   :  { %1036 = vmatprep.mubr.bf16.mxu1 %v1523_v3  ;;  %1009 = vmatpush1.bf16.msra.mxu1 %v1403_v10 }
  0x69   :  { %1010 = vmatprep.subr.bf16.mxu1 %v1408_v11 }
  0x6c   :  { %1011 = vmatpush1.bf16.msra.mxu1 %v1406_v12 }
  0x6d   :  { %1012 = vmatprep.subr.bf16.mxu1 %v1411_v13 }
  0x70   :  { %1013 = vmatpush1.bf16.msra.mxu1 %v1409_v14 }
  0x71   :  { %1014 = vmatprep.subr.bf16.mxu1 %v1414_v15 }
  0x74   :  { %1015 = vmatpush1.bf16.msra.mxu1 %v1412_v16 }
  0x75   :  { %1016 = vmatprep.subr.bf16.mxu1 %v1417_v17 }
  0x78   :  { %1017 = vmatpush1.bf16.msra.mxu1 %v1415_v18 }
  0x79   :  { %1018 = vmatprep.subr.bf16.mxu1 %v1420_v19 }
  0x7c   :  { %1019 = vmatpush1.bf16.msra.mxu1 %v1418_v20 }
  0xfe   :  { %v1217_v24 = vpop.f32.mrf.mxu0  ;;  %v1295_v25 = vpop.f32.mrf.mxu1 }
 0x100   :  { %v1218_v26 = vpop.f32.mrf.mxu0  ;;  %v365_v28 = vpop.f32.mrf.mxu1 }
 0x101   :  { %v1219_v29 = vadd.f32 %v1218_v26, %v1217_v24  ;;  %v402_v24 = vld [vmem:[%s1844_s5] sm:$0x3] }
 0x102   :  { %v1220_v30 = vpop.f32.mrf.mxu0  ;;  %v1296_v32 = vpop.f32.mrf.mxu1 }
 0x103   :  { %v317_v31 = vadd.f32 %v1219_v29, %v1111_v27 }
 0x104   :  { %v1221_v33 = vpop.f32.mrf.mxu0  ;;  %v368_v38 = vpop.f32.mrf.mxu1 }
 0x105   :  { %v1222_v34 = vadd.f32 %v1221_v33, %v1220_v30  ;;  %v366_v36 = vadd.f32 %v365_v28, %v317_v31 }
 0x106   :  { %v1223_v35 = vpop.f32.mrf.mxu0 }
 0x107   :  { %v320_v37 = vadd.f32 %v1222_v34, %v1111_v27  ;;  %v380_v43 = vmax.f32 %v366_v36, 0.0 }
 0x108   :  { %v1224_v39 = vpop.f32.mrf.mxu0 }
 0x109   :  { %v369_v40 = vadd.f32 %v368_v38, %v320_v37  ;;  %v1225_v41 = vadd.f32 %v1224_v39, %v1223_v35 }
 0x10a   :  { %v1226_v42 = vpop.f32.mrf.mxu0 }
 0x10b   :  { %v381_v44 = vmax.f32 %v369_v40, 0.0  ;;  %v325_v45 = vadd.f32 %v1225_v41, %v1111_v27 }
 0x10c   :  { %v1227_v46 = vpop.f32.mrf.mxu0 }
 0x10d   :  { %v384_v47 = vpack.c.bf16 %v381_v44, %v380_v43  ;;  %v1228_v48 = vadd.f32 %v1227_v46, %v1226_v42  ;;  %v374_v50 = vadd.f32 %v1295_v25, %v325_v45  ;;  %v411_v25 = vrot.slane %v402_v24, %v410_v23 }
 0x10f   :  { %v328_v51 = vadd.f32 %v1228_v48, %v1111_v27  ;;  %527 = vmatmul.mubr.bf16.vlgmr.msra.gmra.mxu0 %v384_v47  ;;  %v382_v56 = vmax.f32 %v374_v50, 0.0 }
 0x110   :  { %1298 = vmatpush3.bf16.msra.mxu0 %v1723_v2  ;;  %536 = vmatprep.mubr.bf16.mxu0 %v1523_v3  ;;  %v586_v2 = vld [vmem:[%s1840_s1 + $0x58] sm:$0xff] }
 0x111   :  { %v377_v52 = vadd.f32 %v1296_v32, %v328_v51  ;;  %1299 = vmatprep.subr.bf16.mxu0 %v1384_v49  ;;  %v592_v4 = vpack.c.bf16 %v586_v2, %v583_v1 }
 0x113   :  { %v383_v57 = vmax.f32 %v377_v52, 0.0  ;;  %v406_v52 = vsub.s32 0, %v1814_v22 }
 0x114   :  { %1300 = vmatpush3.bf16.msra.mxu0 %v1384_v49 }
 0x115   :  { %1301 = vmatprep.subr.bf16.mxu0 %v1387_v53  ;;  %v385_v59 = vpack.c.bf16 %v383_v57, %v382_v56  ;;  %v407_v56 = vrot.slane %v402_v24, %v406_v52 }
 0x117   :  { %537 = vmatmul.mubr.bf16.gmra.mxu0 %v385_v59 }
 0x118   :  { %1302 = vmatpush3.bf16.msra.mxu0 %v1387_v53  ;;  %1313 = vmatprep.mubr.bf16.mxu0 %v589_v58 }
 0x119   :  { %1303 = vmatprep.subr.bf16.mxu0 %v1390_v60 }
 0x11c   :  { %1304 = vmatpush3.bf16.msra.mxu0 %v1390_v60  ;;  %v1156_v60 = vld [vmem:[%s1846_s7] ss:$0 sm:$0xff] }
 0x11d   :  { %1305 = vmatprep.subr.bf16.mxu0 %v1393_v61 }
 0x11f   :  { %v1255_v30 = vpop.f32.mrf.mxu1 }
 0x120   :  { %1306 = vmatpush3.bf16.msra.mxu0 %v1393_v61 }
 0x121   :  { %1307 = vmatprep.subr.bf16.mxu0 %v1394_v62  ;;  %v1256_v35 = vpop.f32.mrf.mxu1 }
 0x122   :  { %v1257_v57 = vadd.f32 %v1256_v35, %v1255_v30 }
 0x123   :  { %v1258_v40 = vpop.f32.mrf.mxu1 }
 0x124   :  { %1308 = vmatpush3.bf16.msra.mxu0 %v1394_v62 }
 0x125   :  { %1309 = vmatprep.subr.bf16.mxu0 %v1395_v63  ;;  %v1259_v44 = vpop.f32.mrf.mxu1 }
 0x127   :  { %v1261_v47 = vpop.f32.mrf.mxu1 }
 0x128   :  { %1310 = vmatpush3.bf16.msra.mxu0 %v1395_v63  ;;  %v1260_v63 = vadd.f32 %v1259_v44, %v1258_v40 }
 0x129   :  { %1311 = vmatprep.subr.bf16.mxu0 %v1396_v0  ;;  %v1262_v50 = vpop.f32.mrf.mxu1 }
 0x12a   :  { %v1263_v8 = vadd.f32 %v1262_v50, %v1261_v47  ;;  %v830_v10 = vadd.f32 %v1260_v63, %v1156_v60 }
 0x12b   :  { %v1264_v54 = vpop.f32.mrf.mxu1 }
 0x12c   :  { %1312 = vmatpush3.bf16.msra.mxu0 %v1396_v0  ;;  %v835_v17 = vadd.f32 %v1263_v8, %v1156_v60 }
 0x12d   :  { %v1265_v59 = vpop.f32.mrf.mxu1 }
 0x12e   :  { %v1266_v2 = vadd.f32 %v1265_v59, %v1264_v54 }
 0x12f   :  { %1314 = vmatmul.mubr.bf16.vlgmr.msra.gmra.mxu0 %v592_v4  ;;  %v827_v4 = vadd.f32 %v1257_v57, %v1156_v60 }
 0x130   :  { %v838_v13 = vadd.f32 %v1266_v2, %v1156_v60 }
 0x1cf   :  { %v528_v26 = vpop.f32.mrf.mxu0 }
 0x1d0   :  { %v529_v1 = vadd.f32 %v528_v26, %v407_v56 }
 0x1d1   :  { %v530_v27 = vpop.f32.mrf.mxu0 }
 0x1d2   :  { %v531_v28 = vadd.f32 %v530_v27, %v411_v25 }
 0x1d3   :  { %v532_v29 = vpop.f32.mrf.mxu0 }
 0x1d4   :  { %v1152_v31 = vmul.f32 -1.442695, %v531_v28  ;;  %v533_v12 = vadd.f32 %v532_v29, %v407_v56 }
 0x1d5   :  { %v534_v32 = vpop.f32.mrf.mxu0 }
 0x1d6   :  { %1421 = vpow2.f32 %v1152_v31  ;;  %v535_v33 = vadd.f32 %v534_v32, %v411_v25 }
 0x1d7   :  { %v538_v34 = vpop.f32.mrf.mxu0 }
 0x1d8   :  { %v1153_v36 = vmul.f32 -1.442695, %v535_v33  ;;  %v539_v20 = vadd.f32 %v538_v34, %v407_v56  ;;  %v912_v34 = vld [vmem:[%s1848_s9] sm:$0x3]  ;;  %s1524_s9 = smov [#allocation7]  }
 0x1d9   :  { %v540_v37 = vpop.f32.mrf.mxu0  ;;  %v921_v35 = vrot.slane %v912_v34, %v410_v23  ;;  %v917_v57 = vrot.slane %v912_v34, %v406_v52  ;;  %s1098_s8 = sshll.u32 %s1524_s9, 4  ;;  %s1099_s8 = int_to_ptr.vmem [resolvable:$true] %s1098_s8 }
 0x1da   :  { %1423 = vpow2.f32 %v1153_v36  ;;  %v541_v38 = vadd.f32 %v540_v37, %v411_v25  ;;  %s1493_s3 = scalar_lea.vmem %s1099_s8, 1024  ;;  %p1498_p11 = scmp.lt.s32.totalorder %s1099_s8, %s1099_s8 }
 0x1db   :  { %v542_v39 = vpop.f32.mrf.mxu0  ;;  %p1494_p10 = scmp.ne.s32.totalorder %s1099_s8, %s1493_s3  ;;  %p1499_p12 = scmp.lt.s32.totalorder %s1493_s3, %s1493_s3 }
 0x1dc   :  { %v1154_v41 = vmul.f32 -1.442695, %v541_v38  ;;  %v543_v28 = vadd.f32 %v542_v39, %v407_v56 }
 0x1dd   :  { %v544_v42 = vpop.f32.mrf.mxu0  ;;  %p1500_p13 = por %p1499_p12, %p1498_p11 }
 0x1de   :  { %1425 = vpow2.f32 %v1154_v41  ;;  %v545_v43 = vadd.f32 %v544_v42, %v411_v25 }
 0x1df   :  { %p1501_p0 = pnand %p1500_p13, %p1494_p10 }
 0x1e0   :  { %v1155_v45 = vmul.f32 -1.442695, %v545_v43 }
 0x1e2   :  { %1427 = vpow2.f32 %v1155_v45 }
 0x1e3   :  { %v1422_v46 = vpop.eup %1421 }
 0x1e4   :  { %v559_v48 = vadd.f32 1.0, %v1422_v46 }
 0x1e6   :  { %1429 = vrcp.f32 %v559_v48 }
 0x1e7   :  { %v1424_v49 = vpop.eup %1423 }
 0x1e8   :  { %v560_v51 = vadd.f32 1.0, %v1424_v49 }
 0x1ea   :  { %1431 = vrcp.f32 %v560_v51 }
 0x1eb   :  { %v1426_v53 = vpop.eup %1425 }
 0x1ec   :  { %v561_v55 = vadd.f32 1.0, %v1426_v53 }
 0x1ee   :  { %1433 = vrcp.f32 %v561_v55 }
 0x1ef   :  { %v1428_v58 = vpop.eup %1427  ;;  %v1315_v61 = vpop.f32.mrf.mxu0 }
 0x1f0   :  { %v562_v62 = vadd.f32 1.0, %v1428_v58  ;;  %v884_v27 = vadd.f32 %v1315_v61, %v835_v17 }
 0x1f1   :  { %v875_v0 = vpop.f32.mrf.mxu0 }
 0x1f2   :  { %1435 = vrcp.f32 %v562_v62  ;;  %v876_v9 = vadd.f32 %v875_v0, %v827_v4  ;;  %v892_v32 = vmax.f32 %v884_v27, 0.0 }
 0x1f3   :  { %v1430_v5 = vpop.eup %1429  ;;  %v1316_v6 = vpop.f32.mrf.mxu0 }
 0x1f4   :  { %v571_v7 = vmul.f32 %v1430_v5, %v529_v1  ;;  %v890_v18 = vmax.f32 %v876_v9, 0.0  ;;  %v887_v21 = vadd.f32 %v1316_v6, %v838_v13 }
 0x1f5   :  { %v878_v11 = vpop.f32.mrf.mxu0 }
 0x1f6   :  { %1085 = vst [vmem:[#allocation7] sm:$0xff] %v571_v7  ;;  %v879_v14 = vadd.f32 %v878_v11, %v830_v10  ;;  %v893_v29 = vmax.f32 %v887_v21, 0.0 }
 0x1f7   :  { %v1432_v15 = vpop.eup %1431 }
 0x1f8   :  { %v572_v16 = vmul.f32 %v1432_v15, %v533_v12  ;;  %v891_v19 = vmax.f32 %v879_v14, 0.0  ;;  %v895_v33 = vpack.c.bf16 %v893_v29, %v892_v32 }
 0x1fa   :  { %1086 = vst [vmem:[#allocation7 + $0x10] sm:$0xff] %v572_v16  ;;  %v894_v24 = vpack.c.bf16 %v891_v19, %v890_v18 }
 0x1fb   :  { %v1434_v25 = vpop.eup %1433 }
 0x1fc   :  { %v573_v26 = vmul.f32 %v1434_v25, %v539_v20  ;;  %1037 = vmatmul.mubr.bf16.vlgmr.msra.gmra.mxu1 %v894_v24 }
 0x1fd   :  { %1046 = vmatprep.mubr.bf16.mxu1 %v1523_v3 }
 0x1fe   :  { %1087 = vst [vmem:[#allocation7 + $0x20] sm:$0xff] %v573_v26 }
 0x1ff   :  { %v1436_v30 = vpop.eup %1435 }
 0x200   :  { %v574_v31 = vmul.f32 %v1436_v30, %v543_v28 }
 0x202   :  { %1088 = vst [vmem:[#allocation7 + $0x30] sm:$0xff] %v574_v31 }
 0x204   :  { %1047 = vmatmul.mubr.bf16.gmra.mxu1 %v895_v33 }
 0x2bc   :  { %v1038_v36 = vpop.f32.mrf.mxu1 }
 0x2bd   :  { %v1039_v60 = vadd.f32 %v1038_v36, %v917_v57 }
 0x2be   :  { %v1040_v37 = vpop.f32.mrf.mxu1 }
 0x2bf   :  { %v1041_v38 = vadd.f32 %v1040_v37, %v921_v35 }
 0x2c0   :  { %v1042_v3 = vpop.f32.mrf.mxu1 }
 0x2c1   :  { %v1197_v40 = vmul.f32 -1.442695, %v1041_v38  ;;  %v1043_v63 = vadd.f32 %v1042_v3, %v917_v57 }
 0x2c2   :  { %v1044_v39 = vpop.f32.mrf.mxu1 }
 0x2c3   :  { %1437 = vpow2.f32 %v1197_v40  ;;  %v1045_v41 = vadd.f32 %v1044_v39, %v921_v35 }
 0x2c4   :  { %v1048_v42 = vpop.f32.mrf.mxu1 }
 0x2c5   :  { %v1198_v43 = vmul.f32 -1.442695, %v1045_v41  ;;  %v1049_v2 = vadd.f32 %v1048_v42, %v917_v57 }
 0x2c6   :  { %v1050_v44 = vpop.f32.mrf.mxu1 }
 0x2c7   :  { %1439 = vpow2.f32 %v1198_v43  ;;  %v1051_v45 = vadd.f32 %v1050_v44, %v921_v35 }
 0x2c8   :  { %v1052_v46 = vpop.f32.mrf.mxu1 }
 0x2c9   :  { %v1199_v47 = vmul.f32 -1.442695, %v1051_v45  ;;  %v1053_v22 = vadd.f32 %v1052_v46, %v917_v57 }
 0x2ca   :  { %v1054_v48 = vpop.f32.mrf.mxu1 }
 0x2cb   :  { %1441 = vpow2.f32 %v1199_v47  ;;  %v1055_v49 = vadd.f32 %v1054_v48, %v921_v35 }
 0x2cd   :  { %v1200_v50 = vmul.f32 -1.442695, %v1055_v49 }
 0x2cf   :  { %1443 = vpow2.f32 %v1200_v50 }
 0x2d0   :  { %v1438_v23 = vpop.eup %1437 }
 0x2d1   :  { %v1069_v51 = vadd.f32 1.0, %v1438_v23 }
 0x2d3   :  { %1445 = vrcp.f32 %v1069_v51 }
 0x2d4   :  { %v1440_v53 = vpop.eup %1439 }
 0x2d5   :  { %v1070_v54 = vadd.f32 1.0, %v1440_v53 }
 0x2d7   :  { %1447 = vrcp.f32 %v1070_v54 }
 0x2d8   :  { %v1442_v55 = vpop.eup %1441 }
 0x2d9   :  { %v1071_v56 = vadd.f32 1.0, %v1442_v55 }
 0x2db   :  { %1449 = vrcp.f32 %v1071_v56 }
 0x2dc   :  { %v1444_v58 = vpop.eup %1443 }
 0x2dd   :  { %v1072_v59 = vadd.f32 1.0, %v1444_v58 }
 0x2df   :  { %1451 = vrcp.f32 %v1072_v59 }
 0x2e0   :  { %v1446_v61 = vpop.eup %1445 }
 0x2e1   :  { %v1081_v62 = vmul.f32 %v1446_v61, %v1039_v60 }
 0x2e3   :  { %1089 = vst [vmem:[#allocation7 + $0x8] sm:$0xff] %v1081_v62 }
 0x2e4   :  { %v1448_v0 = vpop.eup %1447 }
 0x2e5   :  { %v1082_v1 = vmul.f32 %v1448_v0, %v1043_v63 }
 0x2e7   :  { %1090 = vst [vmem:[#allocation7 + $0x18] sm:$0xff] %v1082_v1 }
 0x2e8   :  { %v1450_v4 = vpop.eup %1449 }
 0x2e9   :  { %v1083_v5 = vmul.f32 %v1450_v4, %v1049_v2 }
 0x2eb   :  { %1091 = vst [vmem:[#allocation7 + $0x28] sm:$0xff] %v1083_v5 }
 0x2ec   :  { %v1452_v52 = vpop.eup %1451 }
 0x2ed   :  { %v1084_v6 = vmul.f32 %v1452_v52, %v1053_v22 }
 0x2ef   :  { %1092 = vst [vmem:[#allocation7 + $0x38] sm:$0xff] %v1084_v6 }
 0x2f0   :  { %1504 = shalt.err (!%p1501_p0)
}
 0x2f1   :  { %s1525_s11 = smov 256   ;;  %s1526_s12 = smov 16  }
 0x2f2   :  { %1104 = dma.vmem_to_hbm [thread:$0]  %s1099_s8, 1024, %s1849_s10, [#allocation4], %s1525_s11, %s1525_s11, %s1526_s12  }
 0x2f3   :  { %1517 = dma.done.wait [#allocation4], 1024  }
 0x2f4   :  { %1518 = vsyncadd [#allocation4], 4294966272 }
 0x2f5   :  { %1108 = vsyncpa [#allocation3], 1 }
 0x2f6   :  { %1109 = vsyncpa [#allocation6], 1 }
 0x2f7   :  { %1110 = vsyncpa [#allocation4], 1 }

</bundles_post_ra>
